<compile_context>
chip_gen: v7x
topology: tpu7x:2x2x1
jax: 0.10.0
libtpu: 0.0.40
codegen_flags: <defaults>
</compile_context>

<pallas_src>
import jax
import jax.numpy as jnp
from jax import lax
from jax.experimental import pallas as pl
from jax.experimental.pallas import tpu as pltpu


def _gru_kernel(x_ref, h0_ref,
                wih_t_ref, whh_t_ref, bih_ref, bhh_ref,
                wl_t_ref, bl_ref,
                logp_ref, hn_ref,
                gi_ref):
    """Full GRU rollout + Linear + LogSoftmax in one invocation.

    x_ref     : (seq_len, input_size)   f32
    h0_ref    : (1, hidden)             f32
    wih_t_ref : (input_size, 3*hidden)  f32   (pre-transposed weight_ih_l0, gates r,z,n)
    whh_t_ref : (hidden, 3*hidden)      f32   (pre-transposed weight_hh_l0)
    bih_ref   : (1, 3*hidden)           f32
    bhh_ref   : (1, 3*hidden)           f32
    wl_t_ref  : (hidden, output)        f32   (pre-transposed nn.Linear weight)
    bl_ref    : (1, output)             f32
    logp_ref  : (1, output)             f32   (log-softmax output)
    hn_ref    : (1, hidden)             f32   (final hidden state)
    gi_ref    : (seq_len, 3*hidden)     f32   VMEM scratch for the hoisted input proj.
    """
    seq_len = x_ref.shape[0]
    hidden = h0_ref.shape[1]

    # Hoisted input projection for ALL timesteps: one real (seq_len x 3H) matmul
    # instead of seq_len degenerate M=1 matmuls inside the serial chain.
    gi_ref[...] = (
        jnp.dot(x_ref[...], wih_t_ref[...], preferred_element_type=jnp.float32)
        + bih_ref[...]
    )

    whh_t = whh_t_ref[...]      # (H, 3H)
    bhh = bhh_ref[...]          # (1, 3H)

    def step(t, h):
        gi = gi_ref[pl.ds(t, 1), :]                                           # (1, 3H)
        gh = jnp.dot(h, whh_t, preferred_element_type=jnp.float32) + bhh      # (1, 3H)

        # One sigmoid over the contiguous (1, 2H) slice covers both r and z.
        rz = jax.nn.sigmoid(gi[:, :2 * hidden] + gh[:, :2 * hidden])
        r = rz[:, :hidden]
        z = rz[:, hidden:]
        n = jnp.tanh(gi[:, 2 * hidden:] + r * gh[:, 2 * hidden:])
        # (1-z)*n + z*h rewritten with one fewer op on the dependency chain.
        return n + z * (h - n)

    # seq_len is static and small -> fully unroll so adjacent steps can co-issue.
    h_final = lax.fori_loop(0, seq_len, step, h0_ref[...], unroll=True)       # (1, H)
    hn_ref[...] = h_final

    # Linear: h_final @ W_lin^T + b_lin  (W_lin already transposed by the wrapper)
    logits = (
        jnp.dot(h_final, wl_t_ref[...], preferred_element_type=jnp.float32)
        + bl_ref[...]
    )                                                                         # (1, out)

    # Numerically stable LogSoftmax(dim=-1)
    m = jnp.max(logits, axis=-1, keepdims=True)
    shifted = logits - m
    lse = jnp.log(jnp.sum(jnp.exp(shifted), axis=-1, keepdims=True))
    logp_ref[...] = shifted - lse


def my_gru_forward(x, hidden, params):
    """Mirror of MyGRU.forward.

    x      : (seq_len, input_size)      -- PyTorch `input` before .unsqueeze(1)
    hidden : (num_layers=1, 1, hidden)  -- PyTorch `hidden`
    returns (log_probs (1, output_size), hn (1, 1, hidden))
    """
    seq_len, input_size = x.shape
    hidden_size = params["w_hh"].shape[1]
    output_size = params["w_lin"].shape[0]

    h0 = hidden.reshape(1, hidden_size).astype(jnp.float32)

    # Whole-array operands, resident in VMEM; no grid (single invocation).
    vmem = pl.BlockSpec(memory_space=pltpu.MemorySpace.VMEM)

    logp, hn = pl.pallas_call(
        _gru_kernel,
        out_shape=(
            jax.ShapeDtypeStruct((1, output_size), jnp.float32),
            jax.ShapeDtypeStruct((1, hidden_size), jnp.float32),
        ),
        in_specs=[vmem] * 8,
        out_specs=(vmem, vmem),
        scratch_shapes=[pltpu.VMEM((seq_len, 3 * hidden_size), jnp.float32)],
    )(
        x.astype(jnp.float32), h0,
        params["w_ih"].T,                      # (input, 3H)  pre-transposed
        params["w_hh"].T,                      # (H, 3H)      pre-transposed
        params["b_ih"].reshape(1, -1), params["b_hh"].reshape(1, -1),
        params["w_lin"].T,                     # (H, out)     pre-transposed
        params["b_lin"].reshape(1, -1),
    )
    return logp, hn.reshape(1, 1, hidden_size)


def init_params(key, input_size, hidden_size, output_size):
    """Deterministic init, matching PyTorch's U(-1/sqrt(H), 1/sqrt(H)) convention."""
    ks = jax.random.split(key, 6)
    bound = 1.0 / jnp.sqrt(hidden_size)
    u = lambda k, shape: jax.random.uniform(k, shape, jnp.float32, -bound, bound)
    return {
        # gate order (r, z, n) as in torch.nn.GRU
        "w_ih": u(ks[0], (3 * hidden_size, input_size)),
        "w_hh": u(ks[1], (3 * hidden_size, hidden_size)),
        "b_ih": u(ks[2], (3 * hidden_size,)),
        "b_hh": u(ks[3], (3 * hidden_size,)),
        "w_lin": u(ks[4], (output_size, hidden_size)),
        "b_lin": u(ks[5], (output_size,)),
    }


def _reference_forward(x, hidden, params):
    """Pure-JAX reference of the same math (sanity check)."""
    H = params["w_hh"].shape[1]
    h = hidden.reshape(1, H)
    for t in range(x.shape[0]):
        x_t = x[t:t + 1]
        gi = x_t @ params["w_ih"].T + params["b_ih"]
        gh = h @ params["w_hh"].T + params["b_hh"]
        i_r, i_z, i_n = gi[:, :H], gi[:, H:2 * H], gi[:, 2 * H:]
        h_r, h_z, h_n = gh[:, :H], gh[:, H:2 * H], gh[:, 2 * H:]
        r = jax.nn.sigmoid(i_r + h_r)
        z = jax.nn.sigmoid(i_z + h_z)
        n = jnp.tanh(i_n + r * h_n)
        h = (1.0 - z) * n + z * h
    logits = h @ params["w_lin"].T + params["b_lin"]
    return jax.nn.log_softmax(logits, axis=-1), h.reshape(1, 1, H)


if __name__ == "__main__":
    # Small shapes consistent with the module (character one-hots -> class log-probs).
    seq_len, input_size, hidden_size, output_size = 8, 16, 32, 8

    key = jax.random.PRNGKey(0)
    k_x, k_p = jax.random.split(key)

    x = jax.random.normal(k_x, (seq_len, input_size), jnp.float32)
    hidden0 = jnp.zeros((1, 1, hidden_size), jnp.float32)   # MyGRU.inithidden()
    params = init_params(k_p, input_size, hidden_size, output_size)

    logp, hn = my_gru_forward(x, hidden0, params)
    jax.block_until_ready((logp, hn))

    # sanity-check against the pure-JAX reference
    logp_ref, hn_ref = _reference_forward(x, hidden0, params)
    assert jnp.allclose(logp, logp_ref, atol=1e-5), "log-softmax output mismatch"
    assert jnp.allclose(hn, hn_ref, atol=1e-5), "hidden state mismatch"

    print("KERNEL_OK")
</pallas_src>

<mosaic_0001>
module attributes {stable_mosaic.version = 11 : i64} {
  func.func @_gru_kernel(%arg0: memref<8x16xf32, #tpu.memory_space<vmem>>, %arg1: memref<1x32xf32, #tpu.memory_space<vmem>>, %arg2: memref<16x96xf32, #tpu.memory_space<vmem>>, %arg3: memref<32x96xf32, #tpu.memory_space<vmem>>, %arg4: memref<1x96xf32, #tpu.memory_space<vmem>>, %arg5: memref<1x96xf32, #tpu.memory_space<vmem>>, %arg6: memref<32x8xf32, #tpu.memory_space<vmem>>, %arg7: memref<1x8xf32, #tpu.memory_space<vmem>>, %arg8: memref<1x8xf32, #tpu.memory_space<vmem>>, %arg9: memref<1x32xf32, #tpu.memory_space<vmem>>, %arg10: memref<8x96xf32, #tpu.memory_space<vmem>>) attributes {dimension_semantics = [], scalar_prefetch = 0 : i64, scratch_operands = 1 : i64, tpu.core_type = #tpu.core_type<tc>} {
    %c0 = arith.constant 0 : index
    %c0_0 = arith.constant 0 : index
    %0 = vector.load %arg0[%c0, %c0_0] : memref<8x16xf32, #tpu.memory_space<vmem>>, vector<8x16xf32>
    %c0_1 = arith.constant 0 : index
    %c0_2 = arith.constant 0 : index
    %1 = vector.load %arg2[%c0_1, %c0_2] : memref<16x96xf32, #tpu.memory_space<vmem>>, vector<16x96xf32>
    %cst = arith.constant dense<0.000000e+00> : vector<8x96xf32>
    %2 = tpu.matmul %0, %1, %cst {dimension_numbers = #tpu.dot_dimension_numbers<[1], [0], [0], [1], [0, 0, 1, 1], [], []>} : vector<8x16xf32>, vector<16x96xf32>, vector<8x96xf32> -> vector<8x96xf32>
    %c0_3 = arith.constant 0 : index
    %c0_4 = arith.constant 0 : index
    %3 = vector.load %arg4[%c0_3, %c0_4] : memref<1x96xf32, #tpu.memory_space<vmem>>, vector<1x96xf32>
    %4 = vector.broadcast %3 : vector<1x96xf32> to vector<8x96xf32>
    %5 = arith.addf %2, %4 : vector<8x96xf32>
    %c0_5 = arith.constant 0 : index
    %c0_6 = arith.constant 0 : index
    %6 = vector.load %arg10[%c0_5, %c0_6] : memref<8x96xf32, #tpu.memory_space<vmem>>, vector<8x96xf32>
    tpu.vector_store %arg10[%c0_5, %c0_6], %5 {strides = array<i32>} : memref<8x96xf32, #tpu.memory_space<vmem>>, vector<8x96xf32>,
    %c0_7 = arith.constant 0 : index
    %c0_8 = arith.constant 0 : index
    %7 = vector.load %arg3[%c0_7, %c0_8] : memref<32x96xf32, #tpu.memory_space<vmem>>, vector<32x96xf32>
    %c0_9 = arith.constant 0 : index
    %c0_10 = arith.constant 0 : index
    %8 = vector.load %arg5[%c0_9, %c0_10] : memref<1x96xf32, #tpu.memory_space<vmem>>, vector<1x96xf32>
    %c0_11 = arith.constant 0 : index
    %c0_12 = arith.constant 0 : index
    %9 = vector.load %arg1[%c0_11, %c0_12] : memref<1x32xf32, #tpu.memory_space<vmem>>, vector<1x32xf32>
    %c0_i32 = arith.constant 0 : i32
    %10 = arith.index_cast %c0_i32 : i32 to index
    %c0_13 = arith.constant 0 : index
    %11 = vector.load %arg10[%10, %c0_13] : memref<8x96xf32, #tpu.memory_space<vmem>>, vector<1x96xf32>
    %cst_14 = arith.constant dense<0.000000e+00> : vector<1x96xf32>
    %12 = tpu.matmul %9, %7, %cst_14 {dimension_numbers = #tpu.dot_dimension_numbers<[1], [0], [0], [1], [0, 0, 1, 1], [], []>} : vector<1x32xf32>, vector<32x96xf32>, vector<1x96xf32> -> vector<1x96xf32>
    %13 = arith.addf %12, %8 : vector<1x96xf32>
    %14 = vector.extract_strided_slice %11 {offsets = [0, 0], sizes = [1, 64], strides = [1, 1]} : vector<1x96xf32> to vector<1x64xf32>
    %15 = vector.extract_strided_slice %13 {offsets = [0, 0], sizes = [1, 64], strides = [1, 1]} : vector<1x96xf32> to vector<1x64xf32>
    %16 = arith.addf %14, %15 : vector<1x64xf32>
    %17 = arith.negf %16 : vector<1x64xf32>
    %18 = math.exp %17 : vector<1x64xf32>
    %cst_15 = arith.constant 1.000000e+00 : f32
    %19 = vector.broadcast %cst_15 : f32 to vector<1x64xf32>
    %20 = arith.addf %19, %18 : vector<1x64xf32>
    %21 = arith.divf %19, %20 : vector<1x64xf32>
    %22 = vector.extract_strided_slice %21 {offsets = [0, 0], sizes = [1, 32], strides = [1, 1]} : vector<1x64xf32> to vector<1x32xf32>
    %23 = vector.extract_strided_slice %21 {offsets = [0, 32], sizes = [1, 32], strides = [1, 1]} : vector<1x64xf32> to vector<1x32xf32>
    %24 = vector.extract_strided_slice %11 {offsets = [0, 64], sizes = [1, 32], strides = [1, 1]} : vector<1x96xf32> to vector<1x32xf32>
    %25 = vector.extract_strided_slice %13 {offsets = [0, 64], sizes = [1, 32], strides = [1, 1]} : vector<1x96xf32> to vector<1x32xf32>
    %26 = arith.mulf %22, %25 : vector<1x32xf32>
    %27 = arith.addf %24, %26 : vector<1x32xf32>
    %28 = math.tanh %27 : vector<1x32xf32>
    %29 = arith.subf %9, %28 : vector<1x32xf32>
    %30 = arith.mulf %23, %29 : vector<1x32xf32>
    %31 = arith.addf %28, %30 : vector<1x32xf32>
    %c1_i32 = arith.constant 1 : i32
    %32 = arith.index_cast %c1_i32 : i32 to index
    %c0_16 = arith.constant 0 : index
    %33 = vector.load %arg10[%32, %c0_16] : memref<8x96xf32, #tpu.memory_space<vmem>>, vector<1x96xf32>
    %cst_17 = arith.constant dense<0.000000e+00> : vector<1x96xf32>
    %34 = tpu.matmul %31, %7, %cst_17 {dimension_numbers = #tpu.dot_dimension_numbers<[1], [0], [0], [1], [0, 0, 1, 1], [], []>} : vector<1x32xf32>, vector<32x96xf32>, vector<1x96xf32> -> vector<1x96xf32>
    %35 = arith.addf %34, %8 : vector<1x96xf32>
    %36 = vector.extract_strided_slice %33 {offsets = [0, 0], sizes = [1, 64], strides = [1, 1]} : vector<1x96xf32> to vector<1x64xf32>
    %37 = vector.extract_strided_slice %35 {offsets = [0, 0], sizes = [1, 64], strides = [1, 1]} : vector<1x96xf32> to vector<1x64xf32>
    %38 = arith.addf %36, %37 : vector<1x64xf32>
    %39 = arith.negf %38 : vector<1x64xf32>
    %40 = math.exp %39 : vector<1x64xf32>
    %cst_18 = arith.constant 1.000000e+00 : f32
    %41 = vector.broadcast %cst_18 : f32 to vector<1x64xf32>
    %42 = arith.addf %41, %40 : vector<1x64xf32>
    %43 = arith.divf %41, %42 : vector<1x64xf32>
    %44 = vector.extract_strided_slice %43 {offsets = [0, 0], sizes = [1, 32], strides = [1, 1]} : vector<1x64xf32> to vector<1x32xf32>
    %45 = vector.extract_strided_slice %43 {offsets = [0, 32], sizes = [1, 32], strides = [1, 1]} : vector<1x64xf32> to vector<1x32xf32>
    %46 = vector.extract_strided_slice %33 {offsets = [0, 64], sizes = [1, 32], strides = [1, 1]} : vector<1x96xf32> to vector<1x32xf32>
    %47 = vector.extract_strided_slice %35 {offsets = [0, 64], sizes = [1, 32], strides = [1, 1]} : vector<1x96xf32> to vector<1x32xf32>
    %48 = arith.mulf %44, %47 : vector<1x32xf32>
    %49 = arith.addf %46, %48 : vector<1x32xf32>
    %50 = math.tanh %49 : vector<1x32xf32>
    %51 = arith.subf %31, %50 : vector<1x32xf32>
    %52 = arith.mulf %45, %51 : vector<1x32xf32>
    %53 = arith.addf %50, %52 : vector<1x32xf32>
    %c2_i32 = arith.constant 2 : i32
    %54 = arith.index_cast %c2_i32 : i32 to index
    %c0_19 = arith.constant 0 : index
    %55 = vector.load %arg10[%54, %c0_19] : memref<8x96xf32, #tpu.memory_space<vmem>>, vector<1x96xf32>
    %cst_20 = arith.constant dense<0.000000e+00> : vector<1x96xf32>
    %56 = tpu.matmul %53, %7, %cst_20 {dimension_numbers = #tpu.dot_dimension_numbers<[1], [0], [0], [1], [0, 0, 1, 1], [], []>} : vector<1x32xf32>, vector<32x96xf32>, vector<1x96xf32> -> vector<1x96xf32>
    %57 = arith.addf %56, %8 : vector<1x96xf32>
    %58 = vector.extract_strided_slice %55 {offsets = [0, 0], sizes = [1, 64], strides = [1, 1]} : vector<1x96xf32> to vector<1x64xf32>
    %59 = vector.extract_strided_slice %57 {offsets = [0, 0], sizes = [1, 64], strides = [1, 1]} : vector<1x96xf32> to vector<1x64xf32>
    %60 = arith.addf %58, %59 : vector<1x64xf32>
    %61 = arith.negf %60 : vector<1x64xf32>
    %62 = math.exp %61 : vector<1x64xf32>
    %cst_21 = arith.constant 1.000000e+00 : f32
    %63 = vector.broadcast %cst_21 : f32 to vector<1x64xf32>
    %64 = arith.addf %63, %62 : vector<1x64xf32>
    %65 = arith.divf %63, %64 : vector<1x64xf32>
    %66 = vector.extract_strided_slice %65 {offsets = [0, 0], sizes = [1, 32], strides = [1, 1]} : vector<1x64xf32> to vector<1x32xf32>
    %67 = vector.extract_strided_slice %65 {offsets = [0, 32], sizes = [1, 32], strides = [1, 1]} : vector<1x64xf32> to vector<1x32xf32>
    %68 = vector.extract_strided_slice %55 {offsets = [0, 64], sizes = [1, 32], strides = [1, 1]} : vector<1x96xf32> to vector<1x32xf32>
    %69 = vector.extract_strided_slice %57 {offsets = [0, 64], sizes = [1, 32], strides = [1, 1]} : vector<1x96xf32> to vector<1x32xf32>
    %70 = arith.mulf %66, %69 : vector<1x32xf32>
    %71 = arith.addf %68, %70 : vector<1x32xf32>
    %72 = math.tanh %71 : vector<1x32xf32>
    %73 = arith.subf %53, %72 : vector<1x32xf32>
    %74 = arith.mulf %67, %73 : vector<1x32xf32>
    %75 = arith.addf %72, %74 : vector<1x32xf32>
    %c3_i32 = arith.constant 3 : i32
    %76 = arith.index_cast %c3_i32 : i32 to index
    %c0_22 = arith.constant 0 : index
    %77 = vector.load %arg10[%76, %c0_22] : memref<8x96xf32, #tpu.memory_space<vmem>>, vector<1x96xf32>
    %cst_23 = arith.constant dense<0.000000e+00> : vector<1x96xf32>
    %78 = tpu.matmul %75, %7, %cst_23 {dimension_numbers = #tpu.dot_dimension_numbers<[1], [0], [0], [1], [0, 0, 1, 1], [], []>} : vector<1x32xf32>, vector<32x96xf32>, vector<1x96xf32> -> vector<1x96xf32>
    %79 = arith.addf %78, %8 : vector<1x96xf32>
    %80 = vector.extract_strided_slice %77 {offsets = [0, 0], sizes = [1, 64], strides = [1, 1]} : vector<1x96xf32> to vector<1x64xf32>
    %81 = vector.extract_strided_slice %79 {offsets = [0, 0], sizes = [1, 64], strides = [1, 1]} : vector<1x96xf32> to vector<1x64xf32>
    %82 = arith.addf %80, %81 : vector<1x64xf32>
    %83 = arith.negf %82 : vector<1x64xf32>
    %84 = math.exp %83 : vector<1x64xf32>
    %cst_24 = arith.constant 1.000000e+00 : f32
    %85 = vector.broadcast %cst_24 : f32 to vector<1x64xf32>
    %86 = arith.addf %85, %84 : vector<1x64xf32>
    %87 = arith.divf %85, %86 : vector<1x64xf32>
    %88 = vector.extract_strided_slice %87 {offsets = [0, 0], sizes = [1, 32], strides = [1, 1]} : vector<1x64xf32> to vector<1x32xf32>
    %89 = vector.extract_strided_slice %87 {offsets = [0, 32], sizes = [1, 32], strides = [1, 1]} : vector<1x64xf32> to vector<1x32xf32>
    %90 = vector.extract_strided_slice %77 {offsets = [0, 64], sizes = [1, 32], strides = [1, 1]} : vector<1x96xf32> to vector<1x32xf32>
    %91 = vector.extract_strided_slice %79 {offsets = [0, 64], sizes = [1, 32], strides = [1, 1]} : vector<1x96xf32> to vector<1x32xf32>
    %92 = arith.mulf %88, %91 : vector<1x32xf32>
    %93 = arith.addf %90, %92 : vector<1x32xf32>
    %94 = math.tanh %93 : vector<1x32xf32>
    %95 = arith.subf %75, %94 : vector<1x32xf32>
    %96 = arith.mulf %89, %95 : vector<1x32xf32>
    %97 = arith.addf %94, %96 : vector<1x32xf32>
    %c4_i32 = arith.constant 4 : i32
    %98 = arith.index_cast %c4_i32 : i32 to index
    %c0_25 = arith.constant 0 : index
    %99 = vector.load %arg10[%98, %c0_25] : memref<8x96xf32, #tpu.memory_space<vmem>>, vector<1x96xf32>
    %cst_26 = arith.constant dense<0.000000e+00> : vector<1x96xf32>
    %100 = tpu.matmul %97, %7, %cst_26 {dimension_numbers = #tpu.dot_dimension_numbers<[1], [0], [0], [1], [0, 0, 1, 1], [], []>} : vector<1x32xf32>, vector<32x96xf32>, vector<1x96xf32> -> vector<1x96xf32>
    %101 = arith.addf %100, %8 : vector<1x96xf32>
    %102 = vector.extract_strided_slice %99 {offsets = [0, 0], sizes = [1, 64], strides = [1, 1]} : vector<1x96xf32> to vector<1x64xf32>
    %103 = vector.extract_strided_slice %101 {offsets = [0, 0], sizes = [1, 64], strides = [1, 1]} : vector<1x96xf32> to vector<1x64xf32>
    %104 = arith.addf %102, %103 : vector<1x64xf32>
    %105 = arith.negf %104 : vector<1x64xf32>
    %106 = math.exp %105 : vector<1x64xf32>
    %cst_27 = arith.constant 1.000000e+00 : f32
    %107 = vector.broadcast %cst_27 : f32 to vector<1x64xf32>
    %108 = arith.addf %107, %106 : vector<1x64xf32>
    %109 = arith.divf %107, %108 : vector<1x64xf32>
    %110 = vector.extract_strided_slice %109 {offsets = [0, 0], sizes = [1, 32], strides = [1, 1]} : vector<1x64xf32> to vector<1x32xf32>
    %111 = vector.extract_strided_slice %109 {offsets = [0, 32], sizes = [1, 32], strides = [1, 1]} : vector<1x64xf32> to vector<1x32xf32>
    %112 = vector.extract_strided_slice %99 {offsets = [0, 64], sizes = [1, 32], strides = [1, 1]} : vector<1x96xf32> to vector<1x32xf32>
    %113 = vector.extract_strided_slice %101 {offsets = [0, 64], sizes = [1, 32], strides = [1, 1]} : vector<1x96xf32> to vector<1x32xf32>
    %114 = arith.mulf %110, %113 : vector<1x32xf32>
    %115 = arith.addf %112, %114 : vector<1x32xf32>
    %116 = math.tanh %115 : vector<1x32xf32>
    %117 = arith.subf %97, %116 : vector<1x32xf32>
    %118 = arith.mulf %111, %117 : vector<1x32xf32>
    %119 = arith.addf %116, %118 : vector<1x32xf32>
    %c5_i32 = arith.constant 5 : i32
    %120 = arith.index_cast %c5_i32 : i32 to index
    %c0_28 = arith.constant 0 : index
    %121 = vector.load %arg10[%120, %c0_28] : memref<8x96xf32, #tpu.memory_space<vmem>>, vector<1x96xf32>
    %cst_29 = arith.constant dense<0.000000e+00> : vector<1x96xf32>
    %122 = tpu.matmul %119, %7, %cst_29 {dimension_numbers = #tpu.dot_dimension_numbers<[1], [0], [0], [1], [0, 0, 1, 1], [], []>} : vector<1x32xf32>, vector<32x96xf32>, vector<1x96xf32> -> vector<1x96xf32>
    %123 = arith.addf %122, %8 : vector<1x96xf32>
    %124 = vector.extract_strided_slice %121 {offsets = [0, 0], sizes = [1, 64], strides = [1, 1]} : vector<1x96xf32> to vector<1x64xf32>
    %125 = vector.extract_strided_slice %123 {offsets = [0, 0], sizes = [1, 64], strides = [1, 1]} : vector<1x96xf32> to vector<1x64xf32>
    %126 = arith.addf %124, %125 : vector<1x64xf32>
    %127 = arith.negf %126 : vector<1x64xf32>
    %128 = math.exp %127 : vector<1x64xf32>
    %cst_30 = arith.constant 1.000000e+00 : f32
    %129 = vector.broadcast %cst_30 : f32 to vector<1x64xf32>
    %130 = arith.addf %129, %128 : vector<1x64xf32>
    %131 = arith.divf %129, %130 : vector<1x64xf32>
    %132 = vector.extract_strided_slice %131 {offsets = [0, 0], sizes = [1, 32], strides = [1, 1]} : vector<1x64xf32> to vector<1x32xf32>
    %133 = vector.extract_strided_slice %131 {offsets = [0, 32], sizes = [1, 32], strides = [1, 1]} : vector<1x64xf32> to vector<1x32xf32>
    %134 = vector.extract_strided_slice %121 {offsets = [0, 64], sizes = [1, 32], strides = [1, 1]} : vector<1x96xf32> to vector<1x32xf32>
    %135 = vector.extract_strided_slice %123 {offsets = [0, 64], sizes = [1, 32], strides = [1, 1]} : vector<1x96xf32> to vector<1x32xf32>
    %136 = arith.mulf %132, %135 : vector<1x32xf32>
    %137 = arith.addf %134, %136 : vector<1x32xf32>
    %138 = math.tanh %137 : vector<1x32xf32>
    %139 = arith.subf %119, %138 : vector<1x32xf32>
    %140 = arith.mulf %133, %139 : vector<1x32xf32>
    %141 = arith.addf %138, %140 : vector<1x32xf32>
    %c6_i32 = arith.constant 6 : i32
    %142 = arith.index_cast %c6_i32 : i32 to index
    %c0_31 = arith.constant 0 : index
    %143 = vector.load %arg10[%142, %c0_31] : memref<8x96xf32, #tpu.memory_space<vmem>>, vector<1x96xf32>
    %cst_32 = arith.constant dense<0.000000e+00> : vector<1x96xf32>
    %144 = tpu.matmul %141, %7, %cst_32 {dimension_numbers = #tpu.dot_dimension_numbers<[1], [0], [0], [1], [0, 0, 1, 1], [], []>} : vector<1x32xf32>, vector<32x96xf32>, vector<1x96xf32> -> vector<1x96xf32>
    %145 = arith.addf %144, %8 : vector<1x96xf32>
    %146 = vector.extract_strided_slice %143 {offsets = [0, 0], sizes = [1, 64], strides = [1, 1]} : vector<1x96xf32> to vector<1x64xf32>
    %147 = vector.extract_strided_slice %145 {offsets = [0, 0], sizes = [1, 64], strides = [1, 1]} : vector<1x96xf32> to vector<1x64xf32>
    %148 = arith.addf %146, %147 : vector<1x64xf32>
    %149 = arith.negf %148 : vector<1x64xf32>
    %150 = math.exp %149 : vector<1x64xf32>
    %cst_33 = arith.constant 1.000000e+00 : f32
    %151 = vector.broadcast %cst_33 : f32 to vector<1x64xf32>
    %152 = arith.addf %151, %150 : vector<1x64xf32>
    %153 = arith.divf %151, %152 : vector<1x64xf32>
    %154 = vector.extract_strided_slice %153 {offsets = [0, 0], sizes = [1, 32], strides = [1, 1]} : vector<1x64xf32> to vector<1x32xf32>
    %155 = vector.extract_strided_slice %153 {offsets = [0, 32], sizes = [1, 32], strides = [1, 1]} : vector<1x64xf32> to vector<1x32xf32>
    %156 = vector.extract_strided_slice %143 {offsets = [0, 64], sizes = [1, 32], strides = [1, 1]} : vector<1x96xf32> to vector<1x32xf32>
    %157 = vector.extract_strided_slice %145 {offsets = [0, 64], sizes = [1, 32], strides = [1, 1]} : vector<1x96xf32> to vector<1x32xf32>
    %158 = arith.mulf %154, %157 : vector<1x32xf32>
    %159 = arith.addf %156, %158 : vector<1x32xf32>
    %160 = math.tanh %159 : vector<1x32xf32>
    %161 = arith.subf %141, %160 : vector<1x32xf32>
    %162 = arith.mulf %155, %161 : vector<1x32xf32>
    %163 = arith.addf %160, %162 : vector<1x32xf32>
    %c7_i32 = arith.constant 7 : i32
    %164 = arith.index_cast %c7_i32 : i32 to index
    %c0_34 = arith.constant 0 : index
    %165 = vector.load %arg10[%164, %c0_34] : memref<8x96xf32, #tpu.memory_space<vmem>>, vector<1x96xf32>
    %cst_35 = arith.constant dense<0.000000e+00> : vector<1x96xf32>
    %166 = tpu.matmul %163, %7, %cst_35 {dimension_numbers = #tpu.dot_dimension_numbers<[1], [0], [0], [1], [0, 0, 1, 1], [], []>} : vector<1x32xf32>, vector<32x96xf32>, vector<1x96xf32> -> vector<1x96xf32>
    %167 = arith.addf %166, %8 : vector<1x96xf32>
    %168 = vector.extract_strided_slice %165 {offsets = [0, 0], sizes = [1, 64], strides = [1, 1]} : vector<1x96xf32> to vector<1x64xf32>
    %169 = vector.extract_strided_slice %167 {offsets = [0, 0], sizes = [1, 64], strides = [1, 1]} : vector<1x96xf32> to vector<1x64xf32>
    %170 = arith.addf %168, %169 : vector<1x64xf32>
    %171 = arith.negf %170 : vector<1x64xf32>
    %172 = math.exp %171 : vector<1x64xf32>
    %cst_36 = arith.constant 1.000000e+00 : f32
    %173 = vector.broadcast %cst_36 : f32 to vector<1x64xf32>
    %174 = arith.addf %173, %172 : vector<1x64xf32>
    %175 = arith.divf %173, %174 : vector<1x64xf32>
    %176 = vector.extract_strided_slice %175 {offsets = [0, 0], sizes = [1, 32], strides = [1, 1]} : vector<1x64xf32> to vector<1x32xf32>
    %177 = vector.extract_strided_slice %175 {offsets = [0, 32], sizes = [1, 32], strides = [1, 1]} : vector<1x64xf32> to vector<1x32xf32>
    %178 = vector.extract_strided_slice %165 {offsets = [0, 64], sizes = [1, 32], strides = [1, 1]} : vector<1x96xf32> to vector<1x32xf32>
    %179 = vector.extract_strided_slice %167 {offsets = [0, 64], sizes = [1, 32], strides = [1, 1]} : vector<1x96xf32> to vector<1x32xf32>
    %180 = arith.mulf %176, %179 : vector<1x32xf32>
    %181 = arith.addf %178, %180 : vector<1x32xf32>
    %182 = math.tanh %181 : vector<1x32xf32>
    %183 = arith.subf %163, %182 : vector<1x32xf32>
    %184 = arith.mulf %177, %183 : vector<1x32xf32>
    %185 = arith.addf %182, %184 : vector<1x32xf32>
    %c8_i32 = arith.constant 8 : i32
    %c0_37 = arith.constant 0 : index
    %c0_38 = arith.constant 0 : index
    %186 = vector.load %arg9[%c0_37, %c0_38] : memref<1x32xf32, #tpu.memory_space<vmem>>, vector<1x32xf32>
    tpu.vector_store %arg9[%c0_37, %c0_38], %185 {strides = array<i32>} : memref<1x32xf32, #tpu.memory_space<vmem>>, vector<1x32xf32>,
    %c0_39 = arith.constant 0 : index
    %c0_40 = arith.constant 0 : index
    %187 = vector.load %arg6[%c0_39, %c0_40] : memref<32x8xf32, #tpu.memory_space<vmem>>, vector<32x8xf32>
    %cst_41 = arith.constant dense<0.000000e+00> : vector<1x8xf32>
    %188 = tpu.matmul %185, %187, %cst_41 {dimension_numbers = #tpu.dot_dimension_numbers<[1], [0], [0], [1], [0, 0, 1, 1], [], []>} : vector<1x32xf32>, vector<32x8xf32>, vector<1x8xf32> -> vector<1x8xf32>
    %c0_42 = arith.constant 0 : index
    %c0_43 = arith.constant 0 : index
    %189 = vector.load %arg7[%c0_42, %c0_43] : memref<1x8xf32, #tpu.memory_space<vmem>>, vector<1x8xf32>
    %190 = arith.addf %188, %189 : vector<1x8xf32>
    %cst_44 = arith.constant dense<0xFF800000> : vector<1xf32>
    %191 = vector.multi_reduction <maximumf>, %190, %cst_44 [1] : vector<1x8xf32> to vector<1xf32>
    %192 = vector.shape_cast %191 : vector<1xf32> to vector<1x1xf32>
    %193 = vector.broadcast %192 : vector<1x1xf32> to vector<1x8xf32>
    %194 = arith.subf %190, %193 : vector<1x8xf32>
    %195 = math.exp %194 : vector<1x8xf32>
    %cst_45 = arith.constant dense<0.000000e+00> : vector<1xf32>
    %196 = vector.multi_reduction <add>, %195, %cst_45 [1] : vector<1x8xf32> to vector<1xf32>
    %197 = vector.shape_cast %196 : vector<1xf32> to vector<1x1xf32>
    %198 = math.log %197 : vector<1x1xf32>
    %199 = vector.broadcast %198 : vector<1x1xf32> to vector<1x8xf32>
    %200 = arith.subf %194, %199 : vector<1x8xf32>
    %c0_46 = arith.constant 0 : index
    %c0_47 = arith.constant 0 : index
    %201 = vector.load %arg8[%c0_46, %c0_47] : memref<1x8xf32, #tpu.memory_space<vmem>>, vector<1x8xf32>
    tpu.vector_store %arg8[%c0_46, %c0_47], %200 {strides = array<i32>} : memref<1x8xf32, #tpu.memory_space<vmem>>, vector<1x8xf32>,
    return
  }
}

</mosaic_0001>

<bundles_post_ra>
// kernel: tpu_custom_call.1
= control target key start
LH: loop header
LB: loop body
LE: loop exit
PB: predicated region body
PF: predicated region fallthrough
CT: control target
= control target key end

     0   :  { %15 = vsyncpa [#allocation4], 0  ;;  %s1796_s0 = inlined_call_operand.hbm [shape: f32[8,16], index: 0, kind: input, shape index: {}]   ;;  %s1797_s1 = inlined_call_operand.vmem [shape: f32[1,32], index: 1, kind: input, shape index: {}]   ;;  %s1798_s2 = inlined_call_operand.vmem [shape: f32[16,96], index: 2, kind: input, shape index: {}]   ;;  %s1799_s3 = inlined_call_operand.vmem [shape: f32[32,96], index: 3, kind: input, shape index: {}]   ;;  %s1800_s4 = inlined_call_operand.vmem [shape: f32[1,96], index: 4, kind: input, shape index: {}]   ;;  %s1801_s5 = inlined_call_operand.hbm [shape: f32[1,96], index: 5, kind: input, shape index: {}]   ;;  %s1802_s6 = inlined_call_operand.vmem [shape: f32[32,8], index: 6, kind: input, shape index: {}]   ;;  %s1803_s7 = inlined_call_operand.vmem [shape: f32[1,8], index: 7, kind: input, shape index: {}]   ;;  %s1804_s8 = inlined_call_operand.hbm [shape: f32[1,8], index: 8, kind: output, shape index: {0}]   ;;  %s1805_s9 = inlined_call_operand.hbm [shape: f32[1,32], index: 9, kind: output, shape index: {1}]  }
   0x1   :  { %16 = vsyncpa [#allocation7], 0 }
   0x2   :  { %17 = vsyncpa [#allocation5], 0 }
   0x3   :  { %18 = vsyncpa [#allocation10], 0  ;;  %s1526_s30 = smov [#allocation3]   ;;  %s1527_s11 = smov [#allocation6]  }
   0x4   :  { %s25_s10 = sshll.u32 %s1526_s30, 4  ;;  %s43_s12 = sshll.u32 %s1527_s11, 4  ;;  %s26_s10 = int_to_ptr.vmem [resolvable:$true] %s25_s10  ;;  %s44_s12 = int_to_ptr.vmem [resolvable:$true] %s43_s12 }
   0x5   :  { %s1430_s15 = scalar_lea.hbm %s1796_s0, 128 }
   0x6   :  { %p1431_p0 = scmp.ne.s32.totalorder %s1796_s0, %s1430_s15  ;;  %p1434_p1 = scmp.lt.u32.totalorder %s1430_s15, %s1796_s0 }
   0x8   :  { %p1436_p2 = pnand %p1434_p1, %p1431_p0 }
   0xa   :  { %1439 = shalt.err (!%p1436_p2)
}
   0xb   :  { %s1440_s20 = scalar_lea.vmem %s26_s10, 128  ;;  %p1445_p4 = scmp.lt.s32.totalorder %s26_s10, %s26_s10 }
   0xc   :  { %p1441_p3 = scmp.ne.s32.totalorder %s26_s10, %s1440_s20  ;;  %p1446_p5 = scmp.lt.s32.totalorder %s1440_s20, %s1440_s20 }
   0xe   :  { %p1447_p6 = por %p1446_p5, %p1445_p4 }
  0x10   :  { %p1448_p7 = pnand %p1447_p6, %p1441_p3 }
  0x12   :  { %1451 = shalt.err (!%p1448_p7)
}
  0x13   :  { %28 = dma.hbm_to_vmem [thread:$0]  %s1796_s0, 128, %s26_s10, [#allocation4]  }
  0x14   :  { %s1452_s25 = scalar_lea.hbm %s1801_s5, 16 }
  0x15   :  { %p1453_p8 = scmp.ne.s32.totalorder %s1801_s5, %s1452_s25  ;;  %p1456_p9 = scmp.lt.u32.totalorder %s1452_s25, %s1801_s5 }
  0x17   :  { %p1458_p10 = pnand %p1456_p9, %p1453_p8 }
  0x19   :  { %1461 = shalt.err (!%p1458_p10)
}
  0x1a   :  { %s1462_s30 = scalar_lea.vmem %s44_s12, 16  ;;  %s1466_s11 = scalar_lea.vmem %s44_s12, 32 }
  0x1b   :  { %p1463_p11 = scmp.ne.s32.totalorder %s44_s12, %s1462_s30  ;;  %p1467_p12 = scmp.lt.s32.totalorder %s44_s12, %s44_s12 }
  0x1c   :  { %p1468_p13 = scmp.lt.s32.totalorder %s1466_s11, %s1462_s30 }
  0x1e   :  { %p1469_p0 = por %p1468_p13, %p1467_p12 }
  0x20   :  { %p1470_p1 = pnand %p1469_p0, %p1463_p11 }
  0x22   :  { %1473 = shalt.err (!%p1470_p1)
}
  0x23   :  { %46 = dma.hbm_to_vmem [thread:$0]  %s1801_s5, 16, %s44_s12, [#allocation7]  }
  0x24   :  { %1518 = dma.done.wait [#allocation4], 128  }
  0x25   :  { %1519 = vsyncadd [#allocation4], 4294967168 }
  0x26   :  { %1520 = dma.done.wait [#allocation7], 16  }
  0x27   :  { %1521 = vsyncadd [#allocation7], 4294967280  ;;  %v1528_v0 = vmov 0.0|0.0   ;;  %vm1529_vm0 = vmmov 0   ;;  %v1530_v1 = vmov 0.0   ;;  %v58_v2 = vld [vmem:[%s1798_s2] sm:$0xff]  ;;  %v246_v33 = vlaneseq }
  0x28   :  { %1310 = vmatprep.subr.bf16.mxu0 %v1528_v0  ;;  %1313 = vmatprep.subr.bf16.mxu1 %v1528_v0  ;;  %v59_v3 = vld [vmem:[%s1798_s2 + $0x8] sm:$0xff]  ;;  %v143_v4 = vld [vmem:[%s1799_s3] sm:$0xff]  ;;  %v145_v7 = vld [vmem:[%s1799_s3 + $0x10] sm:$0xff]  ;;  %vm67_vm1 = vcmask 130048   ;;  %vm150_vm2 = vcmask 261120   ;;  %vm141_vm3 = vcmask 785408  }
  0x29   :  { %1208 = vmatprep.mubr.msk.f32.mxu0 %vm1529_vm0, %v1530_v1  ;;  %1219 = vmatprep.mubr.msk.f32.mxu1 %vm1529_vm0, %v1530_v1  ;;  %v1311_v5 = vpack.c.bf16 %v59_v3, %v58_v2  ;;  %v144_v6 = vld [vmem:[%s1799_s3 + $0x8] sm:$0xff]  ;;  %v146_v9 = vld [vmem:[%s1799_s3 + $0x18] sm:$0xff]  ;;  %v148_v12 = vld [vmem:[%s1797_s1] sm:$0x1]  ;;  %s1531_s24 = smov 64   ;;  %v247_v35 = vshrl.u32 %v246_v33, 7 }
  0x2a   :  { %v1632_v8 = vpack.c.bf16 %v144_v6, %v143_v4  ;;  %v57_v10 = vld [vmem:[#allocation3] sm:$0xff]  ;;  %v1638_v11 = vpack.c.bf16 %v146_v9, %v145_v7  ;;  %v1137_v13 = vld [vmem:[%s1800_s4] ss:$0 sm:$0xff]  ;;  %v1663_v17 = vld [vmem:[#allocation6] sm:$0x1]  ;;  %s1533_s4 = smov 32  }
  0x2b   :  { %1312 = vmatpush3.bf16.msra.mxu0 %v1311_v5  ;;  %v1532_v31 = vmov 1966171168   ;;  %v264_v40 = vsub.s32 0, %v247_v35  ;;  %s1534_s25 = smov 96   ;;  %vm1014_vm4 = vcmask 253952   ;;  %vm1093_vm5 = vcmask 57344  }
  0x2c   :  { %1315 = vmatpush3.bf16.msra.mxu1 %v1632_v8  ;;  %1319 = vmatprep.subr.bf16.mxu0 %v1528_v0  ;;  %v244_v32 = vunpack.c.l.s4 %v1532_v31  ;;  %s1535_s14 = smov [#allocation9]  }
  0x2d   :  { %1316 = vmatprep.subr.bf16.mxu1 %v1528_v0  ;;  %s1123_s5 = sshll.u32 %s1535_s14, 4  ;;  %s1124_s5 = int_to_ptr.vmem [resolvable:$true] %s1123_s5 }
  0x2e   :  { %1209 = vmatmul.mubr.msk.f32.vlgmr.msra.gmra.mrb[0].mxu0 %vm67_vm1, %v57_v10  ;;  %v245_v34 = vunpack.c.0.s8 %v244_v32  ;;  %s1474_s12 = scalar_lea.vmem %s1124_s5, 16  ;;  %p1479_p3 = scmp.lt.s32.totalorder %s1124_s5, %s1124_s5 }
  0x2f   :  { %1321 = vmatpush3.bf16.msra.mxu0 %v1632_v8  ;;  %1230 = vmatprep.mubr.msk.f32.mxu0 %vm1529_vm0, %v1530_v1  ;;  %p1475_p2 = scmp.ne.s32.totalorder %s1124_s5, %s1474_s12 }
  0x30   :  { %1318 = vmatpush3.bf16.msra.mxu1 %v1638_v11  ;;  %1322 = vmatprep.subr.bf16.mxu0 %v1528_v0  ;;  %v248_v36 = vsub.s32 %v245_v34, %v247_v35 }
  0x31   :  { %1325 = vmatprep.subr.bf16.mxu1 %v1528_v0 }
  0x33   :  { %1220 = vmatmul.mubr.msk.f32.vlgmr.msra.gmra.mrb[0].mxu1 %vm150_vm2, %v148_v12  ;;  %1324 = vmatpush3.bf16.msra.mxu0 %v1638_v11 }
  0x34   :  { %1327 = vmatpush3.bf16.msra.mxu1 %v1632_v8  ;;  %1241 = vmatprep.mubr.msk.f32.mxu1 %vm1529_vm0, %v1530_v1 }
  0x35   :  { %1328 = vmatprep.subr.bf16.mxu1 %v1528_v0  ;;  %1331 = vmatprep.subr.bf16.mxu0 %v1528_v0 }
  0x38   :  { %1330 = vmatpush3.bf16.msra.mxu1 %v1638_v11 }
  0x39   :  { %1337 = vmatprep.subr.bf16.mxu1 %v1528_v0 }
 0x101   :  { %v137_v14 = vpop.f32.mrb[0].mxu0 }
 0x102   :  { %v138_v15 = vadd.f32 %v1137_v13, %v137_v14  ;;  %v1210_v16 = vpop.f32.mrb[1].mxu0 }
 0x104   :  { %142 = vst.msk [vmem:[#allocation2] sm:$0xff] %vm141_vm3, %v138_v15 }
 0x106   :  { %v220_v18 = vpop.f32.mrb[0].mxu1 }
 0x107   :  { %v221_v19 = vadd.f32 %v220_v18, %v1663_v17  ;;  %v1221_v20 = vpop.f32.mrb[1].mxu1 }
 0x109   :  { %232 = vrot.lane.b32.xlu0 %v221_v19, %s1531_s24 }
 0x10b   :  { %v149_v21 = vld [vmem:[#allocation2] sm:$0x1]  ;;  %v275_v52 = vld [vmem:[#allocation2 + $0x1] sm:$0x1]  ;;  %v485_v33 = vld [vmem:[#allocation2 + $0x3] sm:$0x1] }
 0x10c   :  { %v224_v22 = vadd.f32 %v221_v19, %v149_v21 }
 0x10e   :  { %v1140_v23 = vmul.f32 -1.442695, %v224_v22 }
 0x110   :  { %1378 = vpow2.f32 %v1140_v23 }
 0x11a   :  { %v1379_v24 = vpop.eup %1378 }
 0x11b   :  { %v228_v25 = vadd.f32 1.0, %v1379_v24 }
 0x11d   :  { %1380 = vrcp.f32 %v228_v25 }
 0x127   :  { %v1381_v26 = vpop.eup %1380 }
 0x17b   :  { %v233_v27 = vpop.permute.xlu0 %232 }
 0x17c   :  { %v235_v28 = vmul.f32 %v1381_v26, %v233_v27 }
 0x17e   :  { %237 = vrot.lane.b32.xlu0 %v235_v28, %s1531_s24 }
 0x1f0   :  { %v238_v29 = vpop.permute.xlu0 %237 }
 0x1f1   :  { %v240_v30 = vadd.f32 %v238_v29, %v149_v21 }
 0x1f3   :  { %1382 = vtanh.f32 %v240_v30 }
 0x1fd   :  { %v1383_v37 = vpop.eup %1382 }
 0x1fe   :  { %v249_v38 = vrot.slane %v1383_v37, %v248_v36 }
 0x200   :  { %v256_v39 = vrot.slane %v249_v38, %v248_v36 }
 0x202   :  { %257 = vrot.lane.b32.xlu1 %v256_v39, %s1531_s24 }
 0x274   :  { %v258_v41 = vpop.permute.xlu1 %257 }
 0x275   :  { %v260_v42 = vsub.f32 %v148_v12, %v258_v41  ;;  %v380_v12 = vld [vmem:[#allocation2 + $0x2] sm:$0x1] }
 0x277   :  { %v265_v43 = vrot.slane %v260_v42, %v264_v40 }
 0x279   :  { %266 = vrot.lane.b32.xlu1 %v265_v43, %s1533_s4 }
 0x2eb   :  { %v267_v44 = vpop.permute.xlu1 %266 }
 0x2ec   :  { %v269_v45 = vmul.f32 %v1381_v26, %v267_v44 }
 0x2ee   :  { %271 = vrot.lane.b32.xlu0 %v269_v45, %s1533_s4 }
 0x360   :  { %v272_v46 = vpop.permute.xlu0 %271 }
 0x361   :  { %v274_v47 = vadd.f32 %v1383_v37, %v272_v46 }
 0x363   :  { %277 = vrot.lane.b32.xlu1 %v274_v47, %s1531_s24 }
 0x3d5   :  { %v278_v48 = vpop.permute.xlu1 %277 }
 0x3d6   :  { %1231 = vmatmul.mubr.msk.f32.vlgmr.msra.gmra.mrb[2].mxu0 %vm150_vm2, %v278_v48 }
 0x3d7   :  { %1333 = vmatpush3.bf16.msra.mxu0 %v1632_v8  ;;  %1252 = vmatprep.mubr.msk.f32.mxu0 %vm1529_vm0, %v1530_v1 }
 0x3d8   :  { %1334 = vmatprep.subr.bf16.mxu0 %v1528_v0 }
 0x3db   :  { %1336 = vmatpush3.bf16.msra.mxu0 %v1638_v11 }
 0x3dc   :  { %1343 = vmatprep.subr.bf16.mxu0 %v1528_v0 }
 0x4a9   :  { %v347_v49 = vpop.f32.mrb[2].mxu0 }
 0x4aa   :  { %v348_v50 = vadd.f32 %v347_v49, %v1663_v17  ;;  %v1232_v51 = vpop.f32.mrb[3].mxu0 }
 0x4ac   :  { %359 = vrot.lane.b32.xlu0 %v348_v50, %s1531_s24  ;;  %v351_v53 = vadd.f32 %v348_v50, %v275_v52 }
 0x4ae   :  { %v1142_v54 = vmul.f32 -1.442695, %v351_v53  ;;  %v590_v53 = vld [vmem:[#allocation2 + $0x4] sm:$0x1] }
 0x4b0   :  { %1384 = vpow2.f32 %v1142_v54 }
 0x4ba   :  { %v1385_v55 = vpop.eup %1384 }
 0x4bb   :  { %v355_v56 = vadd.f32 1.0, %v1385_v55 }
 0x4bd   :  { %1386 = vrcp.f32 %v355_v56 }
 0x4c7   :  { %v1387_v57 = vpop.eup %1386 }
 0x51e   :  { %v360_v58 = vpop.permute.xlu0 %359 }
 0x51f   :  { %v362_v59 = vmul.f32 %v1387_v57, %v360_v58 }
 0x521   :  { %364 = vrot.lane.b32.xlu1 %v362_v59, %s1531_s24 }
 0x593   :  { %v365_v60 = vpop.permute.xlu1 %364 }
 0x594   :  { %v367_v61 = vadd.f32 %v365_v60, %v275_v52 }
 0x596   :  { %1388 = vtanh.f32 %v367_v61 }
 0x5a0   :  { %v1389_v62 = vpop.eup %1388 }
 0x5a1   :  { %v369_v63 = vsub.f32 %v274_v47, %v1389_v62 }
 0x5a3   :  { %371 = vrot.lane.b32.xlu0 %v369_v63, %s1534_s25 }
 0x615   :  { %v372_v2 = vpop.permute.xlu0 %371 }
 0x616   :  { %v374_v3 = vmul.f32 %v1387_v57, %v372_v2 }
 0x618   :  { %376 = vrot.lane.b32.xlu1 %v374_v3, %s1533_s4 }
 0x68a   :  { %v377_v4 = vpop.permute.xlu1 %376 }
 0x68b   :  { %v379_v5 = vadd.f32 %v1389_v62, %v377_v4 }
 0x68d   :  { %382 = vrot.lane.b32.xlu0 %v379_v5, %s1531_s24 }
 0x6ff   :  { %v383_v6 = vpop.permute.xlu0 %382 }
 0x700   :  { %1242 = vmatmul.mubr.msk.f32.vlgmr.msra.gmra.mrb[2].mxu1 %vm150_vm2, %v383_v6 }
 0x701   :  { %1339 = vmatpush3.bf16.msra.mxu1 %v1632_v8  ;;  %1263 = vmatprep.mubr.msk.f32.mxu1 %vm1529_vm0, %v1530_v1 }
 0x702   :  { %1340 = vmatprep.subr.bf16.mxu1 %v1528_v0 }
 0x705   :  { %1342 = vmatpush3.bf16.msra.mxu1 %v1638_v11 }
 0x706   :  { %1349 = vmatprep.subr.bf16.mxu1 %v1528_v0 }
 0x7d3   :  { %v452_v7 = vpop.f32.mrb[2].mxu1 }
 0x7d4   :  { %v453_v9 = vadd.f32 %v452_v7, %v1663_v17  ;;  %v1243_v10 = vpop.f32.mrb[3].mxu1 }
 0x7d6   :  { %464 = vrot.lane.b32.xlu1 %v453_v9, %s1531_s24  ;;  %v456_v13 = vadd.f32 %v453_v9, %v380_v12 }
 0x7d8   :  { %v1144_v14 = vmul.f32 -1.442695, %v456_v13  ;;  %v695_v13 = vld [vmem:[#allocation2 + $0x5] sm:$0x1] }
 0x7da   :  { %1390 = vpow2.f32 %v1144_v14 }
 0x7e4   :  { %v1391_v15 = vpop.eup %1390 }
 0x7e5   :  { %v460_v16 = vadd.f32 1.0, %v1391_v15 }
 0x7e7   :  { %1392 = vrcp.f32 %v460_v16 }
 0x7f1   :  { %v1393_v18 = vpop.eup %1392 }
 0x848   :  { %v465_v19 = vpop.permute.xlu1 %464 }
 0x849   :  { %v467_v20 = vmul.f32 %v1393_v18, %v465_v19 }
 0x84b   :  { %469 = vrot.lane.b32.xlu0 %v467_v20, %s1531_s24 }
 0x8bd   :  { %v470_v21 = vpop.permute.xlu0 %469 }
 0x8be   :  { %v472_v22 = vadd.f32 %v470_v21, %v380_v12 }
 0x8c0   :  { %1394 = vtanh.f32 %v472_v22 }
 0x8ca   :  { %v1395_v23 = vpop.eup %1394 }
 0x8cb   :  { %v474_v24 = vsub.f32 %v379_v5, %v1395_v23 }
 0x8cd   :  { %476 = vrot.lane.b32.xlu1 %v474_v24, %s1534_s25 }
 0x93f   :  { %v477_v25 = vpop.permute.xlu1 %476 }
 0x940   :  { %v479_v26 = vmul.f32 %v1393_v18, %v477_v25 }
 0x942   :  { %481 = vrot.lane.b32.xlu0 %v479_v26, %s1533_s4 }
 0x9b4   :  { %v482_v27 = vpop.permute.xlu0 %481 }
 0x9b5   :  { %v484_v28 = vadd.f32 %v1395_v23, %v482_v27 }
 0x9b7   :  { %487 = vrot.lane.b32.xlu1 %v484_v28, %s1531_s24 }
 0xa29   :  { %v488_v29 = vpop.permute.xlu1 %487 }
 0xa2a   :  { %1253 = vmatmul.mubr.msk.f32.vlgmr.msra.gmra.mrb[4].mxu0 %vm150_vm2, %v488_v29 }
 0xa2b   :  { %1345 = vmatpush3.bf16.msra.mxu0 %v1632_v8  ;;  %1274 = vmatprep.mubr.msk.f32.mxu0 %vm1529_vm0, %v1530_v1 }
 0xa2c   :  { %1346 = vmatprep.subr.bf16.mxu0 %v1528_v0 }
 0xa2f   :  { %1348 = vmatpush3.bf16.msra.mxu0 %v1638_v11 }
 0xa30   :  { %1355 = vmatprep.subr.bf16.mxu0 %v1528_v0 }
 0xafd   :  { %v557_v30 = vpop.f32.mrb[4].mxu0 }
 0xafe   :  { %v558_v31 = vadd.f32 %v557_v30, %v1663_v17  ;;  %v1254_v32 = vpop.f32.mrb[5].mxu0 }
 0xaff   :  { %v800_v32 = vld [vmem:[#allocation2 + $0x6] sm:$0x1] }
 0xb00   :  { %569 = vrot.lane.b32.xlu0 %v558_v31, %s1531_s24  ;;  %v561_v34 = vadd.f32 %v558_v31, %v485_v33 }
 0xb02   :  { %v1146_v35 = vmul.f32 -1.442695, %v561_v34 }
 0xb04   :  { %1396 = vpow2.f32 %v1146_v35 }
 0xb0e   :  { %v1397_v36 = vpop.eup %1396 }
 0xb0f   :  { %v565_v37 = vadd.f32 1.0, %v1397_v36 }
 0xb11   :  { %1398 = vrcp.f32 %v565_v37 }
 0xb1b   :  { %v1399_v38 = vpop.eup %1398 }
 0xb72   :  { %v570_v39 = vpop.permute.xlu0 %569 }
 0xb73   :  { %v572_v40 = vmul.f32 %v1399_v38, %v570_v39 }
 0xb75   :  { %574 = vrot.lane.b32.xlu1 %v572_v40, %s1531_s24 }
 0xbe7   :  { %v575_v41 = vpop.permute.xlu1 %574 }
 0xbe8   :  { %v577_v42 = vadd.f32 %v575_v41, %v485_v33 }
 0xbea   :  { %1400 = vtanh.f32 %v577_v42 }
 0xbf4   :  { %v1401_v43 = vpop.eup %1400 }
 0xbf5   :  { %v579_v44 = vsub.f32 %v484_v28, %v1401_v43 }
 0xbf7   :  { %581 = vrot.lane.b32.xlu0 %v579_v44, %s1534_s25 }
 0xc69   :  { %v582_v45 = vpop.permute.xlu0 %581 }
 0xc6a   :  { %v584_v46 = vmul.f32 %v1399_v38, %v582_v45 }
 0xc6c   :  { %586 = vrot.lane.b32.xlu1 %v584_v46, %s1533_s4 }
 0xcde   :  { %v587_v47 = vpop.permute.xlu1 %586 }
 0xcdf   :  { %v589_v48 = vadd.f32 %v1401_v43, %v587_v47 }
 0xce1   :  { %592 = vrot.lane.b32.xlu0 %v589_v48, %s1531_s24 }
 0xd53   :  { %v593_v49 = vpop.permute.xlu0 %592 }
 0xd54   :  { %1264 = vmatmul.mubr.msk.f32.vlgmr.msra.gmra.mrb[4].mxu1 %vm150_vm2, %v593_v49 }
 0xd55   :  { %1351 = vmatpush3.bf16.msra.mxu1 %v1632_v8  ;;  %1285 = vmatprep.mubr.msk.f32.mxu1 %vm1529_vm0, %v1530_v1 }
 0xd56   :  { %1352 = vmatprep.subr.bf16.mxu1 %v1528_v0 }
 0xd59   :  { %1354 = vmatpush3.bf16.msra.mxu1 %v1638_v11 }
 0xd5a   :  { %1361 = vmatprep.subr.bf16.mxu1 %v1528_v0 }
 0xe27   :  { %v662_v50 = vpop.f32.mrb[4].mxu1 }
 0xe28   :  { %v663_v51 = vadd.f32 %v662_v50, %v1663_v17  ;;  %v1265_v52 = vpop.f32.mrb[5].mxu1 }
 0xe2a   :  { %674 = vrot.lane.b32.xlu1 %v663_v51, %s1531_s24  ;;  %v666_v54 = vadd.f32 %v663_v51, %v590_v53  ;;  %v905_v51 = vld [vmem:[#allocation2 + $0x7] sm:$0x1] }
 0xe2c   :  { %v1148_v55 = vmul.f32 -1.442695, %v666_v54 }
 0xe2e   :  { %1402 = vpow2.f32 %v1148_v55 }
 0xe38   :  { %v1403_v56 = vpop.eup %1402 }
 0xe39   :  { %v670_v57 = vadd.f32 1.0, %v1403_v56 }
 0xe3b   :  { %1404 = vrcp.f32 %v670_v57 }
 0xe45   :  { %v1405_v58 = vpop.eup %1404 }
 0xe9c   :  { %v675_v59 = vpop.permute.xlu1 %674 }
 0xe9d   :  { %v677_v60 = vmul.f32 %v1405_v58, %v675_v59 }
 0xe9f   :  { %679 = vrot.lane.b32.xlu0 %v677_v60, %s1531_s24 }
 0xf11   :  { %v680_v61 = vpop.permute.xlu0 %679 }
 0xf12   :  { %v682_v62 = vadd.f32 %v680_v61, %v590_v53 }
 0xf14   :  { %1406 = vtanh.f32 %v682_v62  ;;  %v1016_v62 = vld [vmem:[%s1802_s6] sm:$0xff] }
 0xf1e   :  { %v1407_v63 = vpop.eup %1406 }
 0xf1f   :  { %v684_v2 = vsub.f32 %v589_v48, %v1407_v63 }
 0xf21   :  { %686 = vrot.lane.b32.xlu1 %v684_v2, %s1534_s25  ;;  %v1018_v2 = vld [vmem:[%s1802_s6 + $0x10] sm:$0xff] }
 0xf93   :  { %v687_v3 = vpop.permute.xlu1 %686 }
 0xf94   :  { %v689_v4 = vmul.f32 %v1405_v58, %v687_v3 }
 0xf96   :  { %691 = vrot.lane.b32.xlu0 %v689_v4, %s1533_s4  ;;  %v1019_v4 = vld [vmem:[%s1802_s6 + $0x18] sm:$0xff] }
0x1008   :  { %v692_v5 = vpop.permute.xlu0 %691 }
0x1009   :  { %v694_v6 = vadd.f32 %v1407_v63, %v692_v5  ;;  %v1017_v63 = vld [vmem:[%s1802_s6 + $0x8] sm:$0xff]  ;;  %v1365_v5 = vpack.c.bf16 %v1019_v4, %v1018_v2 }
0x100a   :  { %v1362_v3 = vpack.c.bf16 %v1017_v63, %v1016_v62 }
0x100b   :  { %697 = vrot.lane.b32.xlu1 %v694_v6, %s1531_s24 }
0x107d   :  { %v698_v7 = vpop.permute.xlu1 %697 }
0x107e   :  { %1275 = vmatmul.mubr.msk.f32.vlgmr.msra.gmra.mrb[6].mxu0 %vm150_vm2, %v698_v7 }
0x107f   :  { %1357 = vmatpush3.bf16.msra.mxu0 %v1632_v8  ;;  %1296 = vmatprep.mubr.msk.f32.mxu0 %vm1529_vm0, %v1530_v1 }
0x1080   :  { %1358 = vmatprep.subr.bf16.mxu0 %v1528_v0 }
0x1083   :  { %1360 = vmatpush3.bf16.msra.mxu0 %v1638_v11 }
0x1151   :  { %v767_v9 = vpop.f32.mrb[6].mxu0 }
0x1152   :  { %v768_v10 = vadd.f32 %v767_v9, %v1663_v17  ;;  %v1276_v12 = vpop.f32.mrb[7].mxu0 }
0x1154   :  { %779 = vrot.lane.b32.xlu0 %v768_v10, %s1531_s24  ;;  %v771_v14 = vadd.f32 %v768_v10, %v695_v13 }
0x1156   :  { %v1150_v15 = vmul.f32 -1.442695, %v771_v14 }
0x1158   :  { %1408 = vpow2.f32 %v1150_v15 }
0x1162   :  { %v1409_v16 = vpop.eup %1408 }
0x1163   :  { %v775_v18 = vadd.f32 1.0, %v1409_v16 }
0x1165   :  { %1410 = vrcp.f32 %v775_v18 }
0x116f   :  { %v1411_v8 = vpop.eup %1410 }
0x11c6   :  { %v780_v19 = vpop.permute.xlu0 %779 }
0x11c7   :  { %v782_v20 = vmul.f32 %v1411_v8, %v780_v19 }
0x11c9   :  { %784 = vrot.lane.b32.xlu1 %v782_v20, %s1531_s24 }
0x123b   :  { %v785_v21 = vpop.permute.xlu1 %784 }
0x123c   :  { %v787_v11 = vadd.f32 %v785_v21, %v695_v13  ;;  %v1020_v13 = vld [vmem:[%s1803_s7] sm:$0x1]  ;;  %s1478_s7 = scalar_lea.vmem %s1124_s5, 32 }
0x123d   :  { %p1480_p4 = scmp.lt.s32.totalorder %s1478_s7, %s1474_s12 }
0x123e   :  { %1412 = vtanh.f32 %v787_v11 }
0x123f   :  { %p1481_p5 = por %p1480_p4, %p1479_p3 }
0x1241   :  { %p1482_p6 = pnand %p1481_p5, %p1475_p2 }
0x1248   :  { %v1413_v22 = vpop.eup %1412 }
0x1249   :  { %v789_v23 = vsub.f32 %v694_v6, %v1413_v22 }
0x124b   :  { %791 = vrot.lane.b32.xlu0 %v789_v23, %s1534_s25 }
0x12bd   :  { %v792_v24 = vpop.permute.xlu0 %791 }
0x12be   :  { %v794_v25 = vmul.f32 %v1411_v8, %v792_v24 }
0x12c0   :  { %796 = vrot.lane.b32.xlu1 %v794_v25, %s1533_s4 }
0x1332   :  { %v797_v26 = vpop.permute.xlu1 %796 }
0x1333   :  { %v799_v27 = vadd.f32 %v1413_v22, %v797_v26 }
0x1335   :  { %802 = vrot.lane.b32.xlu0 %v799_v27, %s1531_s24 }
0x13a7   :  { %v803_v28 = vpop.permute.xlu0 %802 }
0x13a8   :  { %1286 = vmatmul.mubr.msk.f32.vlgmr.msra.gmra.mrb[6].mxu1 %vm150_vm2, %v803_v28 }
0x13a9   :  { %1307 = vmatprep.mubr.msk.f32.mxu1 %vm1529_vm0, %v1530_v1  ;;  %1363 = vmatpush3.bf16.msra.mxu1 %v1362_v3 }
0x13aa   :  { %1364 = vmatprep.subr.bf16.mxu1 %v1528_v0 }
0x13ad   :  { %1366 = vmatpush3.bf16.msra.mxu1 %v1365_v5 }
0x147b   :  { %v872_v29 = vpop.f32.mrb[6].mxu1 }
0x147c   :  { %v873_v30 = vadd.f32 %v872_v29, %v1663_v17  ;;  %v1287_v31 = vpop.f32.mrb[7].mxu1 }
0x147e   :  { %884 = vrot.lane.b32.xlu1 %v873_v30, %s1531_s24  ;;  %v876_v33 = vadd.f32 %v873_v30, %v800_v32 }
0x1480   :  { %v1152_v34 = vmul.f32 -1.442695, %v876_v33 }
0x1482   :  { %1414 = vpow2.f32 %v1152_v34 }
0x148c   :  { %v1415_v35 = vpop.eup %1414 }
0x148d   :  { %v880_v36 = vadd.f32 1.0, %v1415_v35 }
0x148f   :  { %1416 = vrcp.f32 %v880_v36 }
0x1499   :  { %v1417_v37 = vpop.eup %1416 }
0x14f0   :  { %v885_v38 = vpop.permute.xlu1 %884 }
0x14f1   :  { %v887_v39 = vmul.f32 %v1417_v37, %v885_v38 }
0x14f3   :  { %889 = vrot.lane.b32.xlu0 %v887_v39, %s1531_s24 }
0x1565   :  { %v890_v40 = vpop.permute.xlu0 %889 }
0x1566   :  { %v892_v1 = vadd.f32 %v890_v40, %v800_v32 }
0x1568   :  { %1418 = vtanh.f32 %v892_v1 }
0x1572   :  { %v1419_v41 = vpop.eup %1418 }
0x1573   :  { %v894_v42 = vsub.f32 %v799_v27, %v1419_v41 }
0x1575   :  { %896 = vrot.lane.b32.xlu1 %v894_v42, %s1534_s25 }
0x15e7   :  { %v897_v43 = vpop.permute.xlu1 %896 }
0x15e8   :  { %v899_v44 = vmul.f32 %v1417_v37, %v897_v43 }
0x15ea   :  { %901 = vrot.lane.b32.xlu0 %v899_v44, %s1533_s4 }
0x165c   :  { %v902_v45 = vpop.permute.xlu0 %901 }
0x165d   :  { %v904_v46 = vadd.f32 %v1419_v41, %v902_v45 }
0x165f   :  { %907 = vrot.lane.b32.xlu1 %v904_v46, %s1531_s24 }
0x16d1   :  { %v908_v47 = vpop.permute.xlu1 %907 }
0x16d2   :  { %1297 = vmatmul.mubr.msk.f32.vlgmr.msra.gmra.mrb[8].mxu0 %vm150_vm2, %v908_v47 }
0x17a5   :  { %v977_v48 = vpop.f32.mrb[8].mxu0 }
0x17a6   :  { %v978_v49 = vadd.f32 %v977_v48, %v1663_v17  ;;  %v1298_v50 = vpop.f32.mrb[9].mxu0 }
0x17a8   :  { %989 = vrot.lane.b32.xlu0 %v978_v49, %s1531_s24  ;;  %v981_v52 = vadd.f32 %v978_v49, %v905_v51 }
0x17aa   :  { %v1154_v53 = vmul.f32 -1.442695, %v981_v52 }
0x17ac   :  { %1420 = vpow2.f32 %v1154_v53 }
0x17b6   :  { %v1421_v54 = vpop.eup %1420 }
0x17b7   :  { %v985_v55 = vadd.f32 1.0, %v1421_v54 }
0x17b9   :  { %1422 = vrcp.f32 %v985_v55 }
0x17c3   :  { %v1423_v56 = vpop.eup %1422 }
0x181a   :  { %v990_v57 = vpop.permute.xlu0 %989 }
0x181b   :  { %v992_v58 = vmul.f32 %v1423_v56, %v990_v57 }
0x181d   :  { %994 = vrot.lane.b32.xlu1 %v992_v58, %s1531_s24 }
0x188f   :  { %v995_v59 = vpop.permute.xlu1 %994 }
0x1890   :  { %v997_v60 = vadd.f32 %v995_v59, %v905_v51 }
0x1892   :  { %1424 = vtanh.f32 %v997_v60 }
0x189c   :  { %v1425_v61 = vpop.eup %1424 }
0x189d   :  { %v999_v17 = vsub.f32 %v904_v46, %v1425_v61 }
0x189f   :  { %1001 = vrot.lane.b32.xlu0 %v999_v17, %s1534_s25 }
0x1911   :  { %v1002_v6 = vpop.permute.xlu0 %1001 }
0x1912   :  { %v1004_v7 = vmul.f32 %v1423_v56, %v1002_v6 }
0x1914   :  { %1006 = vrot.lane.b32.xlu1 %v1004_v7, %s1533_s4 }
0x1986   :  { %v1007_v9 = vpop.permute.xlu1 %1006 }
0x1987   :  { %v1009_v10 = vadd.f32 %v1425_v61, %v1007_v9 }
0x1989   :  { %1011 = vrot.lane.b32.xlu0 %v1009_v10, %s1531_s24 }
0x19fb   :  { %v1012_v12 = vpop.permute.xlu0 %1011 }
0x19fc   :  { %1308 = vmatmul.mubr.msk.f32.vlgmr.msra.gmra.mrb[8].mxu1 %vm150_vm2, %v1012_v12  ;;  %1015 = vst.msk [vmem:[#allocation9] sm:$0x1] %vm1014_vm4, %v1012_v12 }
0x1acf   :  { %v1089_v14 = vpop.f32.mrb[8].mxu1 }
0x1ad0   :  { %v1090_v0 = vadd.f32 %v1089_v14, %v1020_v13  ;;  %v1309_v15 = vpop.f32.mrb[9].mxu1 }
0x1ad2   :  { %v1094_v16 = vsel %vm1093_vm5, %v1090_v0, -inf }
0x1ad3   :  { %1095 = vmax.xlane.f32.xlu1 %v1094_v16 }
0x1b60   :  { %v1096_v18 = vpop.xlane.xlu1 %1095 }
0x1b61   :  { %v1097_v8 = vsub.f32 %v1090_v0, %v1096_v18 }
0x1b63   :  { %v1098_v19 = vmul.f32 1.442695, %v1097_v8 }
0x1b65   :  { %1426 = vpow2.f32 %v1098_v19 }
0x1b6f   :  { %v1427_v20 = vpop.eup %1426 }
0x1b70   :  { %v1100_v21 = vsel %vm1093_vm5, %v1427_v20, 0.0 }
0x1b71   :  { %1101 = vadd.xlane.f32.xlu0 %v1100_v21 }
0x1b72   :  { %1485 = shalt.err (!%p1482_p6)
}
0x1b73   :  { %s1486_s17 = scalar_lea.hbm %s1805_s9, 16 }
0x1b74   :  { %p1487_p7 = scmp.ne.s32.totalorder %s1805_s9, %s1486_s17  ;;  %p1490_p8 = scmp.lt.u32.totalorder %s1486_s17, %s1805_s9 }
0x1b76   :  { %p1492_p9 = pnand %p1490_p8, %p1487_p7 }
0x1b78   :  { %1495 = shalt.err (!%p1492_p9)
}
0x1b79   :  { %1126 = dma.vmem_to_hbm [thread:$0]  %s1124_s5, 16, %s1805_s9, [#allocation10]  }
0x1b7a   :  { %s1536_s3 = smov [#allocation8]  }
0x1b7b   :  { %s1113_s1 = sshll.u32 %s1536_s3, 4  ;;  %s1114_s1 = int_to_ptr.vmem [resolvable:$true] %s1113_s1 }
0x1b7c   :  { %s1496_s23 = scalar_lea.vmem %s1114_s1, 16  ;;  %s1500_s24 = scalar_lea.vmem %s1114_s1, 32 }
0x1b7d   :  { %p1497_p10 = scmp.ne.s32.totalorder %s1114_s1, %s1496_s23  ;;  %p1501_p11 = scmp.lt.s32.totalorder %s1114_s1, %s1114_s1 }
0x1b7e   :  { %p1502_p12 = scmp.lt.s32.totalorder %s1500_s24, %s1496_s23 }
0x1b80   :  { %p1503_p13 = por %p1502_p12, %p1501_p11 }
0x1b82   :  { %p1504_p0 = pnand %p1503_p13, %p1497_p10 }
0x1bfe   :  { %v1102_v11 = vpop.xlane.xlu0 %1101 }
0x1bff   :  { %1428 = vlog2.f32 %v1102_v11 }
0x1c09   :  { %v1429_v22 = vpop.eup %1428 }
0x1c0a   :  { %v1104_v23 = vmul.f32 0.6931472, %v1429_v22 }
0x1c0c   :  { %v1105_v24 = vsub.f32 %v1097_v8, %v1104_v23 }
0x1c0e   :  { %1106 = vst.msk [vmem:[#allocation8] sm:$0x1] %vm1093_vm5, %v1105_v24 }
0x1c0f   :  { %1507 = shalt.err (!%p1504_p0)
}
0x1c10   :  { %s1508_s25 = scalar_lea.hbm %s1804_s8, 16 }
0x1c11   :  { %p1509_p1 = scmp.ne.s32.totalorder %s1804_s8, %s1508_s25  ;;  %p1512_p2 = scmp.lt.u32.totalorder %s1508_s25, %s1804_s8 }
0x1c13   :  { %p1514_p3 = pnand %p1512_p2, %p1509_p1 }
0x1c15   :  { %1517 = shalt.err (!%p1514_p3)
}
0x1c16   :  { %1116 = dma.vmem_to_hbm [thread:$0]  %s1114_s1, 16, %s1804_s8, [#allocation5]  }
0x1c17   :  { %1522 = dma.done.wait [#allocation5], 16  }
0x1c18   :  { %1523 = vsyncadd [#allocation5], 4294967280 }
0x1c19   :  { %1524 = dma.done.wait [#allocation10], 16  }
0x1c1a   :  { %1525 = vsyncadd [#allocation10], 4294967280 }
0x1c1b   :  { %1133 = vsyncpa [#allocation4], 1 }
0x1c1c   :  { %1134 = vsyncpa [#allocation7], 1 }
0x1c1d   :  { %1135 = vsyncpa [#allocation5], 1 }
0x1c1e   :  { %1136 = vsyncpa [#allocation10], 1 }

</bundles_post_ra>
